<compile_context>
chip_gen: v5e
topology: v5e:2x2
jax: 0.10.0
libtpu: 0.0.40
codegen_flags: <defaults>
</compile_context>

<pallas_src>
import math

import jax
import jax.numpy as jnp
from jax.experimental import pallas as pl
from jax.experimental.pallas import tpu as pltpu

_LANE = 128
_MAX_LANE_WIDTH = 16384                  # cap on packed lane width (keeps one row <= 64 KiB f32)
_TARGET_BLOCK_BYTES = 4 * 1024 * 1024    # ~4 MiB per operand block (85%+ HBM roofline per sweep)
_SMALL_TOTAL_BYTES = 2 * 1024 * 1024     # below this a single block is cheapest
_MIN_GRID_STEPS = 4                      # pipelining + 2-TC sharding on v7x
_VMEM_LIMIT_BYTES = 48 * 1024 * 1024     # 4 * 4 MiB blocks (double-buffered x/out) + headroom


def _scale_kernel(x_ref, s_ref, o_ref):
    """x_ref: (rt, Lw), s_ref: (1, Lw) broadcast over rows, o_ref: (rt, Lw)."""
    o_ref[...] = x_ref[...] * s_ref[...]


def _round_down(v, k):
    return (v // k) * k


def _round_up(v, k):
    return ((v + k - 1) // k) * k


def _sublane_pack(itemsize):
    # Packed-sublane granularity: f32 -> 8, bf16 -> 16, int8/fp8 -> 32.
    return max(8, 32 // itemsize)


def scale_forward(x, scale):
    """Forward pass of Scale: x * scale, scale broadcast along the last dim.

    x     : (..., dim) array
    scale : (dim,)     array
    """
    dim = scale.shape[-1]
    assert x.shape[-1] == dim, (x.shape, scale.shape)
    orig_shape = x.shape

    x2 = x.reshape(-1, dim)
    m = x2.shape[0]
    if m == 0 or dim == 0:
        return x  # nothing to compute

    itemsize = jnp.dtype(x.dtype).itemsize
    scale = scale.astype(x.dtype)

    # ---- lane-dense repack: fold `reps` logical rows into one 128-multiple
    # lane row.  Pad (< reps) rows when m is not a multiple of reps instead of
    # dropping to the narrow (masked-store) layout.
    reps = _LANE // math.gcd(dim, _LANE)
    lane_width = dim * reps
    pad_rows = 0
    if lane_width <= _MAX_LANE_WIDTH:
        pad_rows = (-m) % reps
        if pad_rows:
            x2 = jnp.pad(x2, ((0, pad_rows), (0, 0)))
        rows = (m + pad_rows) // reps
        xp = x2.reshape(rows, lane_width)
        sp = jnp.tile(scale, reps).reshape(1, lane_width)
    else:
        # Very large dim with small gcd vs 128: natural layout is already
        # >=128-lane dense except for a small tail; byte-budgeted tiles below
        # keep blocks within VMEM.
        rows = m
        lane_width = dim
        xp = x2
        sp = scale.reshape(1, dim)

    # ---- byte-budgeted row tiling.
    row_bytes = lane_width * itemsize
    total_bytes = rows * row_bytes
    pack = _sublane_pack(itemsize)
    if total_bytes <= _SMALL_TOTAL_BYTES:
        row_tile = rows                                    # single full block
    else:
        budget_rows = max(pack, _round_down(_TARGET_BLOCK_BYTES // row_bytes, pack))
        steps_rows = max(pack, _round_up(pl.cdiv(rows, _MIN_GRID_STEPS), pack))
        row_tile = min(budget_rows, steps_rows)
        if row_tile >= rows:
            row_tile = rows
    grid = (pl.cdiv(rows, row_tile),)

    cost = pl.CostEstimate(
        flops=int(rows) * int(lane_width),
        transcendentals=0,
        bytes_accessed=2 * int(rows) * int(lane_width) * itemsize
        + int(lane_width) * itemsize,
    )

    y = pl.pallas_call(
        _scale_kernel,
        out_shape=jax.ShapeDtypeStruct((rows, lane_width), x.dtype),
        grid=grid,
        in_specs=[
            pl.BlockSpec((row_tile, lane_width), lambda i: (i, 0)),
            pl.BlockSpec((1, lane_width), lambda i: (0, 0)),
        ],
        out_specs=pl.BlockSpec((row_tile, lane_width), lambda i: (i, 0)),
        compiler_params=pltpu.CompilerParams(
            dimension_semantics=("parallel",),
            vmem_limit_bytes=_VMEM_LIMIT_BYTES,
        ),
        cost_estimate=cost,
    )(xp, sp)

    # ---- unpack back to the logical layout.
    if lane_width != dim:
        y = y.reshape(rows * reps, dim)
    if pad_rows:
        y = y[:m]
    return y.reshape(orig_shape)


def _reference(x, scale):
    """Pure-JAX reference for correctness check."""
    return x * scale


if __name__ == "__main__":
    # Module config: dim=32 (hidden), applied to x of shape (batch=2, seq=8, dim=32).
    B, S, dim = 2, 8, 32

    key = jax.random.PRNGKey(0)
    kx, ks = jax.random.split(key)

    x = jax.random.normal(kx, (B, S, dim), dtype=jnp.float32)
    # Scale parameter: init_value * ones(dim) in the module; perturb it so the
    # test is non-trivial while remaining deterministic.
    scale = 1.0 + 0.1 * jax.random.normal(ks, (dim,), dtype=jnp.float32)

    out = scale_forward(x, scale)
    out = jax.block_until_ready(out)

    ref = _reference(x, scale)
    assert out.shape == x.shape, out.shape
    assert jnp.allclose(out, ref, atol=1e-6, rtol=1e-6), "mismatch vs reference"

    # Also exercise the padded (m % reps != 0) lane-dense path.
    x_odd = jax.random.normal(kx, (3, 5, dim), dtype=jnp.float32)
    out_odd = jax.block_until_ready(scale_forward(x_odd, scale))
    assert jnp.allclose(out_odd, _reference(x_odd, scale), atol=1e-6, rtol=1e-6)

    print("KERNEL_OK")
</pallas_src>

<mosaic_0001>
module attributes {stable_mosaic.version = 11 : i64} {
  func.func @_scale_kernel(%arg0: i32, %arg1: memref<4x128xf32, #tpu.memory_space<vmem>>, %arg2: memref<1x128xf32, #tpu.memory_space<vmem>>, %arg3: memref<4x128xf32, #tpu.memory_space<vmem>>) attributes {dimension_semantics = [#tpu.dimension_semantics<parallel>], iteration_bounds = array<i64: 1>, scalar_prefetch = 0 : i64, scratch_operands = 0 : i64, tpu.core_type = #tpu.core_type<tc>, window_params = [{transform_indices = @transform_0, window_bounds = array<i64: 4, 128>}, {pipeline_mode = #tpu.pipeline_mode<synchronous>, transform_indices = @transform_1, window_bounds = array<i64: 1, 128>}, {transform_indices = @transform_2, window_bounds = array<i64: 4, 128>}]} {
    %c0 = arith.constant 0 : index
    %c0_0 = arith.constant 0 : index
    %0 = vector.load %arg1[%c0, %c0_0] : memref<4x128xf32, #tpu.memory_space<vmem>>, vector<4x128xf32>
    %c0_1 = arith.constant 0 : index
    %c0_2 = arith.constant 0 : index
    %1 = vector.load %arg2[%c0_1, %c0_2] : memref<1x128xf32, #tpu.memory_space<vmem>>, vector<1x128xf32>
    %2 = vector.broadcast %1 : vector<1x128xf32> to vector<4x128xf32>
    %3 = arith.mulf %0, %2 : vector<4x128xf32>
    %c0_3 = arith.constant 0 : index
    %c0_4 = arith.constant 0 : index
    %4 = vector.load %arg3[%c0_3, %c0_4] : memref<4x128xf32, #tpu.memory_space<vmem>>, vector<4x128xf32>
    tpu.vector_store %arg3[%c0_3, %c0_4], %3 {strides = array<i32>} : memref<4x128xf32, #tpu.memory_space<vmem>>, vector<4x128xf32>,
    return
  }
  func.func @transform_0(%arg0: i32) -> (i32, i32) {
    %c0_i32 = arith.constant 0 : i32
    %c0_i32_0 = arith.constant 0 : i32
    return %arg0, %c0_i32 : i32, i32
  }
  func.func @transform_1(%arg0: i32) -> (i32, i32) {
    %c0_i32 = arith.constant 0 : i32
    %c0_i32_0 = arith.constant 0 : i32
    %c0_i32_1 = arith.constant 0 : i32
    return %c0_i32, %c0_i32_0 : i32, i32
  }
  func.func @transform_2(%arg0: i32) -> (i32, i32) {
    %c0_i32 = arith.constant 0 : i32
    %c0_i32_0 = arith.constant 0 : i32
    return %arg0, %c0_i32 : i32, i32
  }
}

</mosaic_0001>

<bundles_post_ra>
// kernel: tpu_custom_call.1
= control target key start
LH: loop header
LB: loop body
LE: loop exit
PB: predicated region body
PF: predicated region fallthrough
CT: control target
= control target key end

     0   :  { %7 = vsyncpa [#allocation3], 0  ;;  %s174_s0 = inlined_call_operand.hbm [shape: f32[4,128], index: 0, kind: input, shape index: {}]   ;;  %s175_s1 = inlined_call_operand.hbm [shape: f32[1,128], index: 1, kind: input, shape index: {}]   ;;  %s176_s2 = inlined_call_operand.hbm [shape: f32[4,128], index: 2, kind: output, shape index: {}]  }
   0x1   :  { %8 = vsyncpa [#allocation6], 0 }
   0x2   :  { %9 = vsyncpa [#allocation4], 0  ;;  %s15_s11 = sshll.u32 %s174_s0, 4  ;;  %s147_s12 = smov [#allocation2]   ;;  %s16_s11 = int_to_ptr.hbm [resolvable:$true] %s15_s11 }
   0x3   :  { %s17_s13 = sshll.u32 %s147_s12, 4  ;;  %s26_s16 = sshll.u32 %s175_s1, 4  ;;  %s18_s13 = int_to_ptr.vmem [resolvable:$true] %s17_s13  ;;  %s27_s16 = int_to_ptr.hbm [resolvable:$true] %s26_s16 }
   0x4   :  { %20 = dma.hbm_to_vmem [thread:$0]  %s16_s11, 64, %s18_s13, [#allocation3]  }
   0x5   :  { %s148_s17 = smov [#allocation5]  }
   0x6   :  { %s28_s18 = sshll.u32 %s148_s17, 4  ;;  %s29_s18 = int_to_ptr.vmem [resolvable:$true] %s28_s18 }
   0x7   :  { %31 = dma.hbm_to_vmem [thread:$0]  %s27_s16, 16, %s29_s18, [#allocation6]  }
   0x8   :  { %141 = dma.done.wait [#allocation3], 64  }
   0x9   :  { %142 = vsyncadd [#allocation3], 4294967232 }
   0xa   :  { %143 = dma.done.wait [#allocation6], 16  }
   0xb   :  { %144 = vsyncadd [#allocation6], 4294967280  ;;  %s149_s19 = smov [#allocation7]   ;;  %s54_s22 = sshll.u32 %s176_s2, 4  ;;  %v40_v0 = vld [vmem:[#allocation2] sm:$0xf]  ;;  %s55_s22 = int_to_ptr.hbm [resolvable:$true] %s54_s22 }
   0xc   :  { %s52_s0 = sshll.u32 %s149_s19, 4  ;;  %v68_v1 = vld [vmem:[#allocation5] ss:$0 sm:$0xff]  ;;  %s53_s0 = int_to_ptr.vmem [resolvable:$true] %s52_s0 }
   0xd   :  { %v45_v2 = vmul.f32 %v68_v1, %v40_v0 }
   0xf   :  { %46 = vst [vmem:[#allocation7] sm:$0xf] %v45_v2 }
  0x10   :  { %57 = dma.vmem_to_hbm [thread:$0]  %s53_s0, 64, %s55_s22, [#allocation4]  }
  0x11   :  { %145 = dma.done.wait [#allocation4], 64  }
  0x12   :  { %146 = vsyncadd [#allocation4], 4294967232 }
  0x13   :  { %62 = vsyncpa [#allocation3], 1 }
  0x14   :  { %63 = vsyncpa [#allocation6], 1 }
  0x15   :  { %64 = vsyncpa [#allocation4], 1 }

</bundles_post_ra>
